<compile_context>
chip_gen: v7x
topology: tpu7x:2x2x1
jax: 0.10.0
libtpu: 0.0.40
codegen_flags: <defaults>
</compile_context>

<pallas_src>
import math

import jax
import jax.numpy as jnp
from jax.experimental import pallas as pl
from jax.experimental.pallas import tpu as pltpu


# ----------------------------------------------------------------------------
# Primary path: zero-copy aliased "view" (no data movement at all).
# ----------------------------------------------------------------------------
def _alias_view_kernel(x_ref, o_ref):
    # o_ref aliases x_ref's HBM buffer (input_output_aliases={0: 0}); a
    # contiguous view moves zero bytes, so the body only pins an ordering
    # dependency on the aliased output.  No DMA, no VMEM, no vector work.
    del x_ref
    pltpu.touch(o_ref)


def view_pallas(x, target_shape):
    """Pallas equivalent of `x.view(target_shape)` for a contiguous tensor."""
    target_shape = tuple(target_shape)
    total = math.prod(x.shape)
    assert total == math.prod(target_shape), "view must preserve element count"

    out = pl.pallas_call(
        _alias_view_kernel,
        out_shape=jax.ShapeDtypeStruct(x.shape, x.dtype),
        in_specs=[pl.BlockSpec(memory_space=pl.ANY)],   # stay in HBM, no auto-DMA
        out_specs=pl.BlockSpec(memory_space=pl.ANY),
        input_output_aliases={0: 0},                    # output IS the input buffer
        cost_estimate=pl.CostEstimate(flops=0, transcendentals=0,
                                      bytes_accessed=0),
    )(x)

    # Metadata-only reshape to the requested view shape.
    return jnp.reshape(out, target_shape)


# ----------------------------------------------------------------------------
# Fallback path: pipelined lane-dense streaming copy (only used if the aliased
# zero-copy path fails to lower on this build).
# ----------------------------------------------------------------------------
def _copy_kernel(x_ref, o_ref):
    # Identity copy of one (tm, H) lane-dense tile: unmasked vld/vst only.
    o_ref[...] = x_ref[...]


def _view_copy_fallback(x, target_shape):
    target_shape = tuple(target_shape)
    total = math.prod(x.shape)
    assert total == math.prod(target_shape), "view must preserve element count"

    h = x.shape[-1]
    rows = total // h
    x2 = jnp.reshape(x, (rows, h))            # metadata-only flatten

    itemsize = jnp.dtype(x2.dtype).itemsize
    row_bytes = h * itemsize

    if rows <= 32:
        tm = rows                             # tiny input: one full-extent block
    else:
        # <= ~4 MiB per block (v7x VMEM headroom), >= 4 grid steps so the
        # pipeline overlaps prefetch/writeback and v7x can shard across TCs,
        # sublane-aligned (multiple of 8).
        tm = max(8, min(rows, (4 << 20) // max(row_bytes, 1)))
        tm = min(tm, max(8, pl.cdiv(rows, 4)))
        tm = max(8, (tm // 8) * 8)

    grid = (pl.cdiv(rows, tm),)               # ragged last block handled by Pallas
    block_bytes = tm * row_bytes
    vmem_limit = int(min(96 << 20, max(32 << 20, 6 * block_bytes)))

    flat = pl.pallas_call(
        _copy_kernel,
        out_shape=jax.ShapeDtypeStruct((rows, h), x2.dtype),
        grid=grid,
        in_specs=[pl.BlockSpec((tm, h), lambda i: (i, 0))],
        out_specs=pl.BlockSpec((tm, h), lambda i: (i, 0)),
        compiler_params=pltpu.CompilerParams(
            dimension_semantics=("parallel",),
            vmem_limit_bytes=vmem_limit,
        ),
        cost_estimate=pl.CostEstimate(flops=0, transcendentals=0,
                                      bytes_accessed=2 * total * itemsize),
    )(x2)

    return jnp.reshape(flat, target_shape)    # metadata-only head split


# ----------------------------------------------------------------------------
# Module forward: M.forward(x439, x452) = x439.view(x452)
# ----------------------------------------------------------------------------
_view_alias_jit = jax.jit(view_pallas, static_argnums=1)
_view_copy_jit = jax.jit(_view_copy_fallback, static_argnums=1)


def module_forward(x439, x452):
    try:
        return jax.block_until_ready(_view_alias_jit(x439, tuple(x452)))
    except Exception:
        # TODO(synk): safety net only -- used if the zero-copy aliased no-op
        # path cannot be lowered on this jax/libtpu build.
        return jax.block_until_ready(_view_copy_jit(x439, tuple(x452)))


if __name__ == "__main__":
    # Shapes from the original module: [1, 384, 768] -> [1, 384, 12, 64].
    B, S, H = 1, 384, 768
    NH, HD = 12, 64

    key = jax.random.PRNGKey(0)
    x439 = jax.random.normal(key, (B, S, H), dtype=jnp.float32)
    x452 = (B, S, NH, HD)  # target view shape (static)

    out = module_forward(x439, x452)
    out = jax.block_until_ready(out)

    # Reference: a contiguous view is exactly a reshape of the buffer.
    ref = jnp.reshape(x439, x452)
    assert out.shape == x452
    assert out.dtype == x439.dtype
    assert bool(jnp.array_equal(out, ref))

    print("KERNEL_OK")
</pallas_src>

<mosaic_0001>
module attributes {stable_mosaic.version = 11 : i64} {
  func.func @_alias_view_kernel(%arg0: memref<1x384x768xf32, #tpu.memory_space<any>>, %arg1: memref<1x384x768xf32, #tpu.memory_space<any>>) attributes {dimension_semantics = [], scalar_prefetch = 0 : i64, scratch_operands = 0 : i64, tpu.core_type = #tpu.core_type<tc>} {
    return
  }
}

module attributes {stable_mosaic.version = 11 : i64} {
  func.func @_copy_kernel(%arg0: i32, %arg1: memref<96x768xf32, #tpu.memory_space<vmem>>, %arg2: memref<96x768xf32, #tpu.memory_space<vmem>>) attributes {dimension_semantics = [#tpu.dimension_semantics<parallel>], iteration_bounds = array<i64: 4>, scalar_prefetch = 0 : i64, scratch_operands = 0 : i64, tpu.core_type = #tpu.core_type<tc>, window_params = [{transform_indices = @transform_0, window_bounds = array<i64: 96, 768>}, {transform_indices = @transform_1, window_bounds = array<i64: 96, 768>}]} {
    %c0 = arith.constant 0 : index
    %c0_0 = arith.constant 0 : index
    %0 = vector.load %arg1[%c0, %c0_0] : memref<96x768xf32, #tpu.memory_space<vmem>>, vector<96x768xf32>
    %c0_1 = arith.constant 0 : index
    %c0_2 = arith.constant 0 : index
    %1 = vector.load %arg2[%c0_1, %c0_2] : memref<96x768xf32, #tpu.memory_space<vmem>>, vector<96x768xf32>
    tpu.vector_store %arg2[%c0_1, %c0_2], %0 {strides = array<i32>} : memref<96x768xf32, #tpu.memory_space<vmem>>, vector<96x768xf32>,
    return
  }
  func.func @transform_0(%arg0: i32) -> (i32, i32) {
    %c0_i32 = arith.constant 0 : i32
    %c0_i32_0 = arith.constant 0 : i32
    return %arg0, %c0_i32 : i32, i32
  }
  func.func @transform_1(%arg0: i32) -> (i32, i32) {
    %c0_i32 = arith.constant 0 : i32
    %c0_i32_0 = arith.constant 0 : i32
    return %arg0, %c0_i32 : i32, i32
  }
}

</mosaic_0001>

<bundles_post_ra>
// kernel: view_pallas.1
= control target key start
LH: loop header
LB: loop body
LE: loop exit
PB: predicated region body
PF: predicated region fallthrough
CT: control target
= control target key end

     0   :  { %s16_s0 = inlined_call_operand.vmem [shape: f32[1,384,768], index: 0, kind: input, shape index: {}, may-alias: {0,1}]   ;;  %s17_s1 = inlined_call_operand.vmem [shape: f32[1,384,768], index: 1, kind: output, shape index: {}, may-alias: {0,1}]  }

// kernel: _view_copy_fallback.1
= control target key start
LH: loop header
LB: loop body
LE: loop exit
PB: predicated region body
PF: predicated region fallthrough
CT: control target
= control target key end

     0   :  { %6 = vsyncpa [#allocation3], 0  ;;  %s742_s0 = inlined_call_operand.hbm [shape: f32[384,768], index: 0, kind: input, shape index: {}]   ;;  %s743_s1 = inlined_call_operand.vmem [shape: f32[384,768], index: 1, kind: output, shape index: {}]  }
   0x1   :  { %8 = vsyncpa [#allocation3 + $0x1], 0  ;;  %s489_s6 = smov 0   ;;  %s491_s7 = smov 0  }
   0x2   :  { %s493_s8 = smov 0   ;;  %s495_s9 = smov 0  }
   0x3 LB: > { %s355_s10 = sadd.s32 4294967295, %s474_s9   ;;  %s509_s11 = sadd.s32 1, %s474_s9   ;;  %s474_s9 = sphi %s495_s9, %s749_s9   ;;  %s470_s8 = sphi %s493_s8, %s748_s8   ;;  %s466_s7 = sphi %s491_s7, %s747_s7   ;;  %s462_s6 = sphi %s489_s6, %s746_s6  }
   0x4   : > { %s18_s12 = ssub.s32 %s474_s9, %s509_s11  ;;  %s21_s13 = sadd.s32 1, %s470_s8 }
   0x5   : > { %p19_p0 = scmp.eq.s32.totalorder %s18_s12, 0  ;;  %p28_p1 = scmp.ne.s32.totalorder %s470_s8, %s466_s7 }
   0x6   : > { %p29_p2 = scmp.eq.s32.totalorder %s474_s9, 0  ;;  %p34_p3 = scmp.ne.s32.totalorder %s466_s7, %s462_s6 }
   0x7   : > { %s519_s14 = scalar_select %p19_p0, %s470_s8, %s21_s13  }
   0x8   : > { %p30_p4 = por %p29_p2, %p28_p1  ;;  %p35_p5 = scmp.eq.s32.totalorder %s355_s10, 0 }
   0x9   : > { %p374_p6 = scmp.lt.s32.totalorder %s474_s9, 4  ;;  %s84_s16 = sand.u32 1, %s470_s8  }
   0xa   : > { %p524_p7 = por %p35_p5, %p34_p3  ;;  %s364_s17 = smul.u32 576, %s84_s16 }
   0xb   : > { %p529_p8 = pnand %p374_p6, %p30_p4  ;;  %s375_s19 = smul.u32 9216, %s474_s9 }
   0xc   : > { %s88_s20 = scalar_lea.vmem [#allocation2], %s364_s17  ;;  %s541_s25 = scalar_lea.sflag [#allocation3], %s84_s16 }
   0xd   : > { %s96_s21 = sshll.u32 %s88_s20, 4  ;;  %s537_s24 = scalar_lea.hbm %s742_s0, %s375_s19  ;;  %s539_s21 = int_to_ptr.vmem [resolvable:$true] %s96_s21 }
   0xe   : > { %s410_s26 = scalar_lea.hbm %s537_s24, 9216  ;;  %p412_p10 = pneg %p529_p8 }
   0xf   : > { %p411_p9 = scmp.ne.s32.totalorder %s537_s24, %s410_s26  ;;  %s415_s29 = scalar_lea.hbm %s742_s0, 36864 }
  0x10   : > { %p416_p13 = scmp.lt.u32.totalorder %s537_s24, %s742_s0  ;;  %p417_p0 = scmp.lt.u32.totalorder %s415_s29, %s410_s26 }
  0x11   : > { %p413_p11 = pnand %p412_p10, %p411_p9  ;;  %p419_p2 = scmp.lt.u32.totalorder %s410_s26, %s537_s24 }
  0x12   : > { %p418_p1 = por %p417_p0, %p416_p13 }
  0x13   : > { %p414_p12 = pneg %p413_p11 }
  0x14   : > { %p420_p3 = por %p419_p2, %p418_p1 }
  0x16   : > { %p421_p4 = pnand %p420_p3, %p414_p12 }
  0x18   : > { %424 = shalt.err (!%p421_p4)
}
  0x19   : > { %s425_s3 = scalar_lea.vmem %s539_s21, 9216  ;;  %s476_s4 = smov [#allocation2]  }
  0x1a   : > { %p426_p5 = scmp.ne.s32.totalorder %s539_s21, %s425_s3  ;;  %s430_s5 = sshll.u32 %s476_s4, 4  ;;  %s431_s5 = int_to_ptr.vmem [resolvable:$false] %s430_s5 }
  0x1b   : > { %s432_s6 = scalar_lea.vmem %s431_s5, 18432  ;;  %p433_p11 = scmp.lt.s32.totalorder %s539_s21, %s431_s5 }
  0x1c   : > { %p428_p6 = pnand %p426_p5, %p412_p10  ;;  %p434_p13 = scmp.lt.s32.totalorder %s432_s6, %s425_s3 }
  0x1e   : > { %p429_p9 = pneg %p428_p6  ;;  %p435_p0 = por %p434_p13, %p433_p11 }
  0x20   : > { %p436_p1 = pnand %p435_p0, %p429_p9 }
  0x22   : > { %439 = shalt.err (!%p436_p1)
}
  0x23   : > { %s477_s12 = smov 768   ;;  %s478_s13 = smov 48  }
  0x24   : > { %373 = dma.hbm_to_vmem [thread:$0]  (!%p529_p8), %s537_s24, 9216, %s539_s21, %s541_s25, %s477_s12, %s477_s12, %s478_s13  }
  0x25   : > { %p360_p10 = scmp.ge.s32.totalorder %s474_s9, 1  ;;  %p104_p12 = scmp.lt.s32.totalorder %s474_s9, 5 }
  0x27   : > { %p105_p2 = pnand %p360_p10, %p104_p12 }
  0x28   : > { %s110_s16 = sand.u32 (!%p105_p2), 1, %s466_s7  }
  0x29   : > { %108 = sbr.rel (%p105_p2) target bundleno = 93 (0x5d), region = 24  ;;  %s111_s19 = scalar_lea.sflag (!%p105_p2), [#allocation3], %s110_s16 }
  0x2a   : > { %s366_s17 = smul.u32 (!%p105_p2), 576, %s110_s16 }
  0x2c   : > { %s572_s20 = scalar_lea.vmem (!%p105_p2), [#allocation2], %s366_s17 }
  0x30   : > { %457 = dma.done.wait (%p524_p7), %s111_s19, 9216  }
  0x31   : > { %459 = vsyncadd (%p524_p7), %s111_s19, 4294958080  ;;  %s135_s18 = smul.u32 12, %s355_s10  ;;  %v142_v0 = vld [vmem:[%s572_s20] sm:$0xff]  ;;  %v143_v1 = vld [vmem:[%s572_s20 + $0x8] sm:$0xff] }
  0x32   : > { %v144_v2 = vld [vmem:[%s572_s20 + $0x10] sm:$0xff]  ;;  %v145_v3 = vld [vmem:[%s572_s20 + $0x18] sm:$0xff]  ;;  %v146_v4 = vld [vmem:[%s572_s20 + $0x20] sm:$0xff] }
  0x33   : > { %p136_p8 = scmp.lt.s32.totalorder %s135_s18, 47  ;;  %v147_v5 = vld [vmem:[%s572_s20 + $0x28] sm:$0xff]  ;;  %v148_v6 = vld [vmem:[%s572_s20 + $0x30] sm:$0xff]  ;;  %v149_v7 = vld [vmem:[%s572_s20 + $0x38] sm:$0xff] }
  0x34   : > { %v150_v8 = vld [vmem:[%s572_s20 + $0x40] sm:$0xff]  ;;  %v151_v9 = vld [vmem:[%s572_s20 + $0x48] sm:$0xff]  ;;  %v152_v10 = vld [vmem:[%s572_s20 + $0x50] sm:$0xff] }
  0x35   : > { %s751_s18 = smov (!%p136_p8, %s135_s18), 47  ;;  %v153_v11 = vld [vmem:[%s572_s20 + $0x58] sm:$0xff]  ;;  %v154_v12 = vld [vmem:[%s572_s20 + $0x60] sm:$0xff]  ;;  %v155_v13 = vld [vmem:[%s572_s20 + $0x68] sm:$0xff] }
  0x36   : > { %s367_s21 = smul.u32 48, %s751_s18  ;;  %v156_v14 = vld [vmem:[%s572_s20 + $0x70] sm:$0xff]  ;;  %v157_v15 = vld [vmem:[%s572_s20 + $0x78] sm:$0xff]  ;;  %v158_v16 = vld [vmem:[%s572_s20 + $0x80] sm:$0xff] }
  0x37   : > { %v159_v17 = vld [vmem:[%s572_s20 + $0x88] sm:$0xff]  ;;  %v160_v18 = vld [vmem:[%s572_s20 + $0x90] sm:$0xff]  ;;  %v161_v19 = vld [vmem:[%s572_s20 + $0x98] sm:$0xff] }
  0x38   : > { %s586_s9 = scalar_lea.vmem %s743_s1, %s367_s21  ;;  %v162_v20 = vld [vmem:[%s572_s20 + $0xa0] sm:$0xff]  ;;  %v163_v21 = vld [vmem:[%s572_s20 + $0xa8] sm:$0xff]  ;;  %v164_v22 = vld [vmem:[%s572_s20 + $0xb0] sm:$0xff] }
  0x39   : > { %214 = vst [vmem:[%s586_s9] sm:$0xff] %v142_v0  ;;  %215 = vst [vmem:[%s586_s9 + $0x8] sm:$0xff] %v143_v1  ;;  %v165_v23 = vld [vmem:[%s572_s20 + $0xb8] sm:$0xff]  ;;  %v166_v24 = vld [vmem:[%s572_s20 + $0xc0] sm:$0xff] }
  0x3a   : > { %216 = vst [vmem:[%s586_s9 + $0x10] sm:$0xff] %v144_v2  ;;  %217 = vst [vmem:[%s586_s9 + $0x18] sm:$0xff] %v145_v3  ;;  %v167_v25 = vld [vmem:[%s572_s20 + $0xc8] sm:$0xff]  ;;  %v168_v26 = vld [vmem:[%s572_s20 + $0xd0] sm:$0xff] }
  0x3b   : > { %218 = vst [vmem:[%s586_s9 + $0x20] sm:$0xff] %v146_v4  ;;  %219 = vst [vmem:[%s586_s9 + $0x28] sm:$0xff] %v147_v5  ;;  %v169_v27 = vld [vmem:[%s572_s20 + $0xd8] sm:$0xff]  ;;  %v170_v28 = vld [vmem:[%s572_s20 + $0xe0] sm:$0xff] }
  0x3c   : > { %220 = vst [vmem:[%s586_s9 + $0x30] sm:$0xff] %v148_v6  ;;  %221 = vst [vmem:[%s586_s9 + $0x38] sm:$0xff] %v149_v7  ;;  %v171_v29 = vld [vmem:[%s572_s20 + $0xe8] sm:$0xff]  ;;  %v172_v30 = vld [vmem:[%s572_s20 + $0xf0] sm:$0xff] }
  0x3d   : > { %222 = vst [vmem:[%s586_s9 + $0x40] sm:$0xff] %v150_v8  ;;  %223 = vst [vmem:[%s586_s9 + $0x48] sm:$0xff] %v151_v9  ;;  %v173_v31 = vld [vmem:[%s572_s20 + $0xf8] sm:$0xff]  ;;  %v174_v32 = vld [vmem:[%s572_s20 + $0x100] sm:$0xff] }
  0x3e   : > { %224 = vst [vmem:[%s586_s9 + $0x50] sm:$0xff] %v152_v10  ;;  %225 = vst [vmem:[%s586_s9 + $0x58] sm:$0xff] %v153_v11  ;;  %v175_v33 = vld [vmem:[%s572_s20 + $0x108] sm:$0xff]  ;;  %v176_v34 = vld [vmem:[%s572_s20 + $0x110] sm:$0xff] }
  0x3f   : > { %226 = vst [vmem:[%s586_s9 + $0x60] sm:$0xff] %v154_v12  ;;  %227 = vst [vmem:[%s586_s9 + $0x68] sm:$0xff] %v155_v13  ;;  %v177_v35 = vld [vmem:[%s572_s20 + $0x118] sm:$0xff]  ;;  %v178_v36 = vld [vmem:[%s572_s20 + $0x120] sm:$0xff] }
  0x40   : > { %228 = vst [vmem:[%s586_s9 + $0x70] sm:$0xff] %v156_v14  ;;  %229 = vst [vmem:[%s586_s9 + $0x78] sm:$0xff] %v157_v15  ;;  %v179_v37 = vld [vmem:[%s572_s20 + $0x128] sm:$0xff]  ;;  %v180_v38 = vld [vmem:[%s572_s20 + $0x130] sm:$0xff] }
  0x41   : > { %230 = vst [vmem:[%s586_s9 + $0x80] sm:$0xff] %v158_v16  ;;  %231 = vst [vmem:[%s586_s9 + $0x88] sm:$0xff] %v159_v17  ;;  %v181_v39 = vld [vmem:[%s572_s20 + $0x138] sm:$0xff]  ;;  %v182_v40 = vld [vmem:[%s572_s20 + $0x140] sm:$0xff] }
  0x42   : > { %232 = vst [vmem:[%s586_s9 + $0x90] sm:$0xff] %v160_v18  ;;  %233 = vst [vmem:[%s586_s9 + $0x98] sm:$0xff] %v161_v19  ;;  %v183_v41 = vld [vmem:[%s572_s20 + $0x148] sm:$0xff]  ;;  %v184_v42 = vld [vmem:[%s572_s20 + $0x150] sm:$0xff] }
  0x43   : > { %234 = vst [vmem:[%s586_s9 + $0xa0] sm:$0xff] %v162_v20  ;;  %235 = vst [vmem:[%s586_s9 + $0xa8] sm:$0xff] %v163_v21  ;;  %v185_v43 = vld [vmem:[%s572_s20 + $0x158] sm:$0xff]  ;;  %v186_v44 = vld [vmem:[%s572_s20 + $0x160] sm:$0xff] }
  0x44   : > { %236 = vst [vmem:[%s586_s9 + $0xb0] sm:$0xff] %v164_v22  ;;  %237 = vst [vmem:[%s586_s9 + $0xb8] sm:$0xff] %v165_v23  ;;  %v187_v45 = vld [vmem:[%s572_s20 + $0x168] sm:$0xff]  ;;  %v188_v46 = vld [vmem:[%s572_s20 + $0x170] sm:$0xff] }
  0x45   : > { %238 = vst [vmem:[%s586_s9 + $0xc0] sm:$0xff] %v166_v24  ;;  %239 = vst [vmem:[%s586_s9 + $0xc8] sm:$0xff] %v167_v25  ;;  %v189_v47 = vld [vmem:[%s572_s20 + $0x178] sm:$0xff]  ;;  %v190_v48 = vld [vmem:[%s572_s20 + $0x180] sm:$0xff] }
  0x46   : > { %240 = vst [vmem:[%s586_s9 + $0xd0] sm:$0xff] %v168_v26  ;;  %241 = vst [vmem:[%s586_s9 + $0xd8] sm:$0xff] %v169_v27  ;;  %v191_v49 = vld [vmem:[%s572_s20 + $0x188] sm:$0xff]  ;;  %v192_v50 = vld [vmem:[%s572_s20 + $0x190] sm:$0xff] }
  0x47   : > { %242 = vst [vmem:[%s586_s9 + $0xe0] sm:$0xff] %v170_v28  ;;  %243 = vst [vmem:[%s586_s9 + $0xe8] sm:$0xff] %v171_v29  ;;  %v193_v51 = vld [vmem:[%s572_s20 + $0x198] sm:$0xff]  ;;  %v194_v52 = vld [vmem:[%s572_s20 + $0x1a0] sm:$0xff] }
  0x48   : > { %244 = vst [vmem:[%s586_s9 + $0xf0] sm:$0xff] %v172_v30  ;;  %245 = vst [vmem:[%s586_s9 + $0xf8] sm:$0xff] %v173_v31  ;;  %v195_v53 = vld [vmem:[%s572_s20 + $0x1a8] sm:$0xff]  ;;  %v196_v54 = vld [vmem:[%s572_s20 + $0x1b0] sm:$0xff] }
  0x49   : > { %246 = vst [vmem:[%s586_s9 + $0x100] sm:$0xff] %v174_v32  ;;  %247 = vst [vmem:[%s586_s9 + $0x108] sm:$0xff] %v175_v33  ;;  %v197_v55 = vld [vmem:[%s572_s20 + $0x1b8] sm:$0xff]  ;;  %v198_v56 = vld [vmem:[%s572_s20 + $0x1c0] sm:$0xff] }
  0x4a   : > { %248 = vst [vmem:[%s586_s9 + $0x110] sm:$0xff] %v176_v34  ;;  %249 = vst [vmem:[%s586_s9 + $0x118] sm:$0xff] %v177_v35  ;;  %v199_v57 = vld [vmem:[%s572_s20 + $0x1c8] sm:$0xff]  ;;  %v200_v58 = vld [vmem:[%s572_s20 + $0x1d0] sm:$0xff] }
  0x4b   : > { %250 = vst [vmem:[%s586_s9 + $0x120] sm:$0xff] %v178_v36  ;;  %251 = vst [vmem:[%s586_s9 + $0x128] sm:$0xff] %v179_v37  ;;  %v201_v59 = vld [vmem:[%s572_s20 + $0x1d8] sm:$0xff]  ;;  %v202_v60 = vld [vmem:[%s572_s20 + $0x1e0] sm:$0xff] }
  0x4c   : > { %252 = vst [vmem:[%s586_s9 + $0x130] sm:$0xff] %v180_v38  ;;  %253 = vst [vmem:[%s586_s9 + $0x138] sm:$0xff] %v181_v39  ;;  %v203_v61 = vld [vmem:[%s572_s20 + $0x1e8] sm:$0xff]  ;;  %v204_v62 = vld [vmem:[%s572_s20 + $0x1f0] sm:$0xff] }
  0x4d   : > { %254 = vst [vmem:[%s586_s9 + $0x140] sm:$0xff] %v182_v40  ;;  %255 = vst [vmem:[%s586_s9 + $0x148] sm:$0xff] %v183_v41  ;;  %v205_v63 = vld [vmem:[%s572_s20 + $0x1f8] sm:$0xff]  ;;  %v206_v0 = vld [vmem:[%s572_s20 + $0x200] sm:$0xff] }
  0x4e   : > { %256 = vst [vmem:[%s586_s9 + $0x150] sm:$0xff] %v184_v42  ;;  %257 = vst [vmem:[%s586_s9 + $0x158] sm:$0xff] %v185_v43  ;;  %v207_v1 = vld [vmem:[%s572_s20 + $0x208] sm:$0xff]  ;;  %v208_v2 = vld [vmem:[%s572_s20 + $0x210] sm:$0xff] }
  0x4f   : > { %258 = vst [vmem:[%s586_s9 + $0x160] sm:$0xff] %v186_v44  ;;  %259 = vst [vmem:[%s586_s9 + $0x168] sm:$0xff] %v187_v45  ;;  %v209_v3 = vld [vmem:[%s572_s20 + $0x218] sm:$0xff]  ;;  %v210_v4 = vld [vmem:[%s572_s20 + $0x220] sm:$0xff] }
  0x50   : > { %260 = vst [vmem:[%s586_s9 + $0x170] sm:$0xff] %v188_v46  ;;  %261 = vst [vmem:[%s586_s9 + $0x178] sm:$0xff] %v189_v47  ;;  %v211_v5 = vld [vmem:[%s572_s20 + $0x228] sm:$0xff]  ;;  %v212_v6 = vld [vmem:[%s572_s20 + $0x230] sm:$0xff] }
  0x51   : > { %262 = vst [vmem:[%s586_s9 + $0x180] sm:$0xff] %v190_v48  ;;  %263 = vst [vmem:[%s586_s9 + $0x188] sm:$0xff] %v191_v49  ;;  %v213_v7 = vld [vmem:[%s572_s20 + $0x238] sm:$0xff] }
  0x52   : > { %264 = vst [vmem:[%s586_s9 + $0x190] sm:$0xff] %v192_v50  ;;  %265 = vst [vmem:[%s586_s9 + $0x198] sm:$0xff] %v193_v51 }
  0x53   : > { %266 = vst [vmem:[%s586_s9 + $0x1a0] sm:$0xff] %v194_v52  ;;  %267 = vst [vmem:[%s586_s9 + $0x1a8] sm:$0xff] %v195_v53 }
  0x54   : > { %268 = vst [vmem:[%s586_s9 + $0x1b0] sm:$0xff] %v196_v54  ;;  %269 = vst [vmem:[%s586_s9 + $0x1b8] sm:$0xff] %v197_v55 }
  0x55   : > { %270 = vst [vmem:[%s586_s9 + $0x1c0] sm:$0xff] %v198_v56  ;;  %271 = vst [vmem:[%s586_s9 + $0x1c8] sm:$0xff] %v199_v57 }
  0x56   : > { %272 = vst [vmem:[%s586_s9 + $0x1d0] sm:$0xff] %v200_v58  ;;  %273 = vst [vmem:[%s586_s9 + $0x1d8] sm:$0xff] %v201_v59 }
  0x57   : > { %274 = vst [vmem:[%s586_s9 + $0x1e0] sm:$0xff] %v202_v60  ;;  %275 = vst [vmem:[%s586_s9 + $0x1e8] sm:$0xff] %v203_v61 }
  0x58   : > { %276 = vst [vmem:[%s586_s9 + $0x1f0] sm:$0xff] %v204_v62  ;;  %277 = vst [vmem:[%s586_s9 + $0x1f8] sm:$0xff] %v205_v63 }
  0x59   : > { %278 = vst [vmem:[%s586_s9 + $0x200] sm:$0xff] %v206_v0  ;;  %279 = vst [vmem:[%s586_s9 + $0x208] sm:$0xff] %v207_v1 }
  0x5a   : > { %280 = vst [vmem:[%s586_s9 + $0x210] sm:$0xff] %v208_v2  ;;  %281 = vst [vmem:[%s586_s9 + $0x218] sm:$0xff] %v209_v3 }
  0x5b   : > { %282 = vst [vmem:[%s586_s9 + $0x220] sm:$0xff] %v210_v4  ;;  %283 = vst [vmem:[%s586_s9 + $0x228] sm:$0xff] %v211_v5 }
  0x5c   : > { %284 = vst [vmem:[%s586_s9 + $0x230] sm:$0xff] %v212_v6  ;;  %285 = vst [vmem:[%s586_s9 + $0x238] sm:$0xff] %v213_v7 }
  0x5d PF: > { %p11_p7 = scmp.ge.s32.totalorder %s509_s11, 6   ;;  %s746_s6 = smov %s466_s7 }
  0x5e   : > { %s747_s7 = smov %s470_s8  ;;  %s748_s8 = smov %s519_s14 }
  0x5f   : > { %s749_s9 = smov %s509_s11  ;;  %13 = sbr.rel (!%p11_p7) target bundleno = 3 (0x3), region = 64 }
  0x66   :  { %310 = vsyncpa [#allocation3], 1 }
  0x67   :  { %312 = vsyncpa [#allocation3 + $0x1], 1 }

</bundles_post_ra>
